<compile_context>
chip_gen: v7x
topology: tpu7x:2x2x1
jax: 0.10.0
libtpu: 0.0.40
codegen_flags: <defaults>
</compile_context>

<pallas_src>
import jax
import jax.numpy as jnp
from jax.experimental import pallas as pl
from jax.experimental.pallas import tpu as pltpu

INPUT_DIM = 28 * 28     # 784
HIDDEN_DIM = 100
OUTPUT_DIM = 10

HIDDEN_PAD = 128        # lane-dense padding of the 100-wide hidden layers
OUTPUT_PAD = 128        # lane-dense padding of the 10-wide output


def _round_up(x, m):
    return ((x + m - 1) // m) * m


def mlp_kernel(x_ref,
               w1_ref, b1_ref,
               w2_ref, b2_ref,
               w3_ref, b3_ref,
               w4_ref, b4_ref,
               o_ref):
    # Fused 4-layer MLP on one batch tile. The f32 input tile is cast to bf16
    # in VMEM (no separate HBM cast pass); matmuls run with bf16 operands and
    # f32 accumulation on the MXU; bias add + ReLU stay in f32 (v5e VPU has no
    # bf16); intermediates are re-cast to bf16 between layers.
    x = x_ref[...].astype(jnp.bfloat16)                             # (tm, 784) bf16

    h = jnp.dot(x, w1_ref[...], preferred_element_type=jnp.float32) + b1_ref[...]
    h = jnp.maximum(h, 0.0).astype(jnp.bfloat16)                    # (tm, 128)

    h = jnp.dot(h, w2_ref[...], preferred_element_type=jnp.float32) + b2_ref[...]
    h = jnp.maximum(h, 0.0).astype(jnp.bfloat16)

    h = jnp.dot(h, w3_ref[...], preferred_element_type=jnp.float32) + b3_ref[...]
    h = jnp.maximum(h, 0.0).astype(jnp.bfloat16)

    out = jnp.dot(h, w4_ref[...], preferred_element_type=jnp.float32) + b4_ref[...]
    o_ref[...] = out.astype(o_ref.dtype)                            # (tm, 128)


def _choose_tm(batch, tile_m):
    """Pick the per-step batch tile."""
    tile_m = max(8, (tile_m // 8) * 8)          # keep the tile a sublane multiple
    if batch > tile_m:
        return tile_m                           # multi-step grid, ragged last tile
    if batch >= 1024:
        # Whole batch fits one tile but is big enough to split: 2 grid steps so
        # v7x's second TensorCore isn't idle under dimension_semantics=parallel.
        return _round_up(pl.cdiv(batch, 2), 8)
    return batch                                # single full-array block (always legal)


def ffnn_three_hidden(x, params, *, tile_m=2048, out_dtype=jnp.bfloat16):
    """x: [batch, INPUT_DIM] float32.  params: padded bf16 weights [in, out] and
    padded f32 biases [1, out] (see init_params).  Returns [batch, OUTPUT_DIM]."""
    batch = x.shape[0]
    tm = _choose_tm(batch, tile_m)
    grid = (pl.cdiv(batch, tm),)
    const = lambda i: (0, 0)   # weights/biases: same block every step -> VMEM resident

    out_padded = pl.pallas_call(
        mlp_kernel,
        out_shape=jax.ShapeDtypeStruct((batch, OUTPUT_PAD), out_dtype),
        grid=grid,
        in_specs=[
            pl.BlockSpec((tm, INPUT_DIM), lambda i: (i, 0)),        # x tile (f32)
            pl.BlockSpec((INPUT_DIM, HIDDEN_PAD), const),           # w1
            pl.BlockSpec((1, HIDDEN_PAD), const),                   # b1
            pl.BlockSpec((HIDDEN_PAD, HIDDEN_PAD), const),          # w2
            pl.BlockSpec((1, HIDDEN_PAD), const),                   # b2
            pl.BlockSpec((HIDDEN_PAD, HIDDEN_PAD), const),          # w3
            pl.BlockSpec((1, HIDDEN_PAD), const),                   # b3
            pl.BlockSpec((HIDDEN_PAD, OUTPUT_PAD), const),          # w4
            pl.BlockSpec((1, OUTPUT_PAD), const),                   # b4
        ],
        out_specs=pl.BlockSpec((tm, OUTPUT_PAD), lambda i: (i, 0)),
        compiler_params=pltpu.CompilerParams(
            dimension_semantics=("parallel",),      # v7x: shard steps across both TCs
            vmem_limit_bytes=64 * 1024 * 1024),     # allow tm up to ~4096 (f32 x tiles)
    )(x,
      params["w1"], params["b1"],
      params["w2"], params["b2"],
      params["w3"], params["b3"],
      params["w4"], params["b4"])

    return out_padded[:, :OUTPUT_DIM]


def init_params(key):
    """nn.Linear-style U(-1/sqrt(fan_in), 1/sqrt(fan_in)) init, then zero-padded to
    lane-multiple widths. Weights stored as [in, out] bf16, biases as [1, out] f32.
    Padded columns/bias entries are zero, so ReLU(0 + 0) = 0 keeps padded lanes
    inert through all layers."""
    dims = [(INPUT_DIM, HIDDEN_DIM, INPUT_DIM, HIDDEN_PAD),
            (HIDDEN_DIM, HIDDEN_DIM, HIDDEN_PAD, HIDDEN_PAD),
            (HIDDEN_DIM, HIDDEN_DIM, HIDDEN_PAD, HIDDEN_PAD),
            (HIDDEN_DIM, OUTPUT_DIM, HIDDEN_PAD, OUTPUT_PAD)]
    params = {}
    keys = jax.random.split(key, 2 * len(dims))
    for i, (fan_in, fan_out, in_pad, out_pad) in enumerate(dims):
        bound = 1.0 / float(fan_in) ** 0.5
        w = jax.random.uniform(keys[2 * i], (fan_in, fan_out),
                               minval=-bound, maxval=bound, dtype=jnp.float32)
        b = jax.random.uniform(keys[2 * i + 1], (1, fan_out),
                               minval=-bound, maxval=bound, dtype=jnp.float32)
        w_pad = jnp.zeros((in_pad, out_pad), jnp.float32).at[:fan_in, :fan_out].set(w)
        b_pad = jnp.zeros((1, out_pad), jnp.float32).at[:, :fan_out].set(b)
        params[f"w{i + 1}"] = w_pad.astype(jnp.bfloat16)
        params[f"b{i + 1}"] = b_pad
    return params


def reference_forward(x, params):
    """Pure-JAX reference with the same bf16-operand / f32-accumulation recipe
    (output kept in f32; the kernel's bf16 output adds only bf16 rounding)."""
    h = x.astype(jnp.bfloat16).astype(jnp.float32)
    for i in (1, 2, 3):
        w = params[f"w{i}"].astype(jnp.float32)
        h = jnp.maximum(h @ w + params[f"b{i}"], 0.0)
        h = h.astype(jnp.bfloat16).astype(jnp.float32)
    out = h @ params["w4"].astype(jnp.float32) + params["b4"]
    return out[:, :OUTPUT_DIM]


if __name__ == "__main__":
    key = jax.random.PRNGKey(0)
    k_params, k_x = jax.random.split(key)

    params = init_params(k_params)

    # Small single-step case (overhead-bound by design; correctness check only).
    batch = 8
    x = jax.random.normal(k_x, (batch, INPUT_DIM), dtype=jnp.float32)
    out = jax.block_until_ready(ffnn_three_hidden(x, params))
    ref = reference_forward(x, params)
    assert out.shape == (batch, OUTPUT_DIM), out.shape
    assert jnp.allclose(out.astype(jnp.float32), ref, atol=1e-2, rtol=1e-2), \
        "mismatch vs reference (batch=8)"

    # Multi-step grid with a ragged last tile: exercises batch tiling, masked
    # edge writes, and weight residency across grid steps (no host-side pad).
    batch2 = 300
    x2 = jax.random.normal(jax.random.PRNGKey(1), (batch2, INPUT_DIM), dtype=jnp.float32)
    out2 = jax.block_until_ready(ffnn_three_hidden(x2, params, tile_m=128))
    ref2 = reference_forward(x2, params)
    assert out2.shape == (batch2, OUTPUT_DIM), out2.shape
    assert jnp.allclose(out2.astype(jnp.float32), ref2, atol=1e-2, rtol=1e-2), \
        "mismatch vs reference (batch=300)"

    print("KERNEL_OK")
</pallas_src>

<mosaic_0001>
module attributes {stable_mosaic.version = 11 : i64} {
  func.func @mlp_kernel(%arg0: i32, %arg1: memref<8x784xf32, #tpu.memory_space<vmem>>, %arg2: memref<784x128xbf16, #tpu.memory_space<vmem>>, %arg3: memref<1x128xf32, #tpu.memory_space<vmem>>, %arg4: memref<128x128xbf16, #tpu.memory_space<vmem>>, %arg5: memref<1x128xf32, #tpu.memory_space<vmem>>, %arg6: memref<128x128xbf16, #tpu.memory_space<vmem>>, %arg7: memref<1x128xf32, #tpu.memory_space<vmem>>, %arg8: memref<128x128xbf16, #tpu.memory_space<vmem>>, %arg9: memref<1x128xf32, #tpu.memory_space<vmem>>, %arg10: memref<8x128xbf16, #tpu.memory_space<vmem>>) attributes {dimension_semantics = [#tpu.dimension_semantics<parallel>], iteration_bounds = array<i64: 1>, scalar_prefetch = 0 : i64, scratch_operands = 0 : i64, tpu.core_type = #tpu.core_type<tc>, window_params = [{transform_indices = @transform_0, window_bounds = array<i64: 8, 784>}, {pipeline_mode = #tpu.pipeline_mode<synchronous>, transform_indices = @transform_1, window_bounds = array<i64: 784, 128>}, {pipeline_mode = #tpu.pipeline_mode<synchronous>, transform_indices = @transform_2, window_bounds = array<i64: 1, 128>}, {pipeline_mode = #tpu.pipeline_mode<synchronous>, transform_indices = @transform_3, window_bounds = array<i64: 128, 128>}, {pipeline_mode = #tpu.pipeline_mode<synchronous>, transform_indices = @transform_4, window_bounds = array<i64: 1, 128>}, {pipeline_mode = #tpu.pipeline_mode<synchronous>, transform_indices = @transform_5, window_bounds = array<i64: 128, 128>}, {pipeline_mode = #tpu.pipeline_mode<synchronous>, transform_indices = @transform_6, window_bounds = array<i64: 1, 128>}, {pipeline_mode = #tpu.pipeline_mode<synchronous>, transform_indices = @transform_7, window_bounds = array<i64: 128, 128>}, {pipeline_mode = #tpu.pipeline_mode<synchronous>, transform_indices = @transform_8, window_bounds = array<i64: 1, 128>}, {transform_indices = @transform_9, window_bounds = array<i64: 8, 128>}]} {
    %c0 = arith.constant 0 : index
    %c0_0 = arith.constant 0 : index
    %0 = vector.load %arg1[%c0, %c0_0] : memref<8x784xf32, #tpu.memory_space<vmem>>, vector<8x784xf32>
    %1 = arith.truncf %0 : vector<8x784xf32> to vector<8x784xbf16>
    %c0_1 = arith.constant 0 : index
    %c0_2 = arith.constant 0 : index
    %2 = vector.load %arg2[%c0_1, %c0_2] : memref<784x128xbf16, #tpu.memory_space<vmem>>, vector<784x128xbf16>
    %cst = arith.constant dense<0.000000e+00> : vector<8x128xf32>
    %3 = tpu.matmul %1, %2, %cst {dimension_numbers = #tpu.dot_dimension_numbers<[1], [0], [0], [1], [0, 0, 1, 1], [], []>} : vector<8x784xbf16>, vector<784x128xbf16>, vector<8x128xf32> -> vector<8x128xf32>
    %c0_3 = arith.constant 0 : index
    %c0_4 = arith.constant 0 : index
    %4 = vector.load %arg3[%c0_3, %c0_4] : memref<1x128xf32, #tpu.memory_space<vmem>>, vector<1x128xf32>
    %5 = vector.broadcast %4 : vector<1x128xf32> to vector<8x128xf32>
    %6 = arith.addf %3, %5 : vector<8x128xf32>
    %cst_5 = arith.constant 0.000000e+00 : f32
    %7 = vector.broadcast %cst_5 : f32 to vector<8x128xf32>
    %8 = arith.maximumf %6, %7 : vector<8x128xf32>
    %9 = arith.truncf %8 : vector<8x128xf32> to vector<8x128xbf16>
    %c0_6 = arith.constant 0 : index
    %c0_7 = arith.constant 0 : index
    %10 = vector.load %arg4[%c0_6, %c0_7] : memref<128x128xbf16, #tpu.memory_space<vmem>>, vector<128x128xbf16>
    %cst_8 = arith.constant dense<0.000000e+00> : vector<8x128xf32>
    %11 = tpu.matmul %9, %10, %cst_8 {dimension_numbers = #tpu.dot_dimension_numbers<[1], [0], [0], [1], [0, 0, 1, 1], [], []>} : vector<8x128xbf16>, vector<128x128xbf16>, vector<8x128xf32> -> vector<8x128xf32>
    %c0_9 = arith.constant 0 : index
    %c0_10 = arith.constant 0 : index
    %12 = vector.load %arg5[%c0_9, %c0_10] : memref<1x128xf32, #tpu.memory_space<vmem>>, vector<1x128xf32>
    %13 = vector.broadcast %12 : vector<1x128xf32> to vector<8x128xf32>
    %14 = arith.addf %11, %13 : vector<8x128xf32>
    %cst_11 = arith.constant 0.000000e+00 : f32
    %15 = vector.broadcast %cst_11 : f32 to vector<8x128xf32>
    %16 = arith.maximumf %14, %15 : vector<8x128xf32>
    %17 = arith.truncf %16 : vector<8x128xf32> to vector<8x128xbf16>
    %c0_12 = arith.constant 0 : index
    %c0_13 = arith.constant 0 : index
    %18 = vector.load %arg6[%c0_12, %c0_13] : memref<128x128xbf16, #tpu.memory_space<vmem>>, vector<128x128xbf16>
    %cst_14 = arith.constant dense<0.000000e+00> : vector<8x128xf32>
    %19 = tpu.matmul %17, %18, %cst_14 {dimension_numbers = #tpu.dot_dimension_numbers<[1], [0], [0], [1], [0, 0, 1, 1], [], []>} : vector<8x128xbf16>, vector<128x128xbf16>, vector<8x128xf32> -> vector<8x128xf32>
    %c0_15 = arith.constant 0 : index
    %c0_16 = arith.constant 0 : index
    %20 = vector.load %arg7[%c0_15, %c0_16] : memref<1x128xf32, #tpu.memory_space<vmem>>, vector<1x128xf32>
    %21 = vector.broadcast %20 : vector<1x128xf32> to vector<8x128xf32>
    %22 = arith.addf %19, %21 : vector<8x128xf32>
    %cst_17 = arith.constant 0.000000e+00 : f32
    %23 = vector.broadcast %cst_17 : f32 to vector<8x128xf32>
    %24 = arith.maximumf %22, %23 : vector<8x128xf32>
    %25 = arith.truncf %24 : vector<8x128xf32> to vector<8x128xbf16>
    %c0_18 = arith.constant 0 : index
    %c0_19 = arith.constant 0 : index
    %26 = vector.load %arg8[%c0_18, %c0_19] : memref<128x128xbf16, #tpu.memory_space<vmem>>, vector<128x128xbf16>
    %cst_20 = arith.constant dense<0.000000e+00> : vector<8x128xf32>
    %27 = tpu.matmul %25, %26, %cst_20 {dimension_numbers = #tpu.dot_dimension_numbers<[1], [0], [0], [1], [0, 0, 1, 1], [], []>} : vector<8x128xbf16>, vector<128x128xbf16>, vector<8x128xf32> -> vector<8x128xf32>
    %c0_21 = arith.constant 0 : index
    %c0_22 = arith.constant 0 : index
    %28 = vector.load %arg9[%c0_21, %c0_22] : memref<1x128xf32, #tpu.memory_space<vmem>>, vector<1x128xf32>
    %29 = vector.broadcast %28 : vector<1x128xf32> to vector<8x128xf32>
    %30 = arith.addf %27, %29 : vector<8x128xf32>
    %31 = arith.truncf %30 : vector<8x128xf32> to vector<8x128xbf16>
    %c0_23 = arith.constant 0 : index
    %c0_24 = arith.constant 0 : index
    %32 = vector.load %arg10[%c0_23, %c0_24] : memref<8x128xbf16, #tpu.memory_space<vmem>>, vector<8x128xbf16>
    tpu.vector_store %arg10[%c0_23, %c0_24], %31 {strides = array<i32>} : memref<8x128xbf16, #tpu.memory_space<vmem>>, vector<8x128xbf16>,
    return
  }
  func.func @transform_0(%arg0: i32) -> (i32, i32) {
    %c0_i32 = arith.constant 0 : i32
    %c0_i32_0 = arith.constant 0 : i32
    return %arg0, %c0_i32 : i32, i32
  }
  func.func @transform_1(%arg0: i32) -> (i32, i32) {
    %c0_i32 = arith.constant 0 : i32
    %c0_i32_0 = arith.constant 0 : i32
    %c0_i32_1 = arith.constant 0 : i32
    return %c0_i32, %c0_i32_0 : i32, i32
  }
  func.func @transform_2(%arg0: i32) -> (i32, i32) {
    %c0_i32 = arith.constant 0 : i32
    %c0_i32_0 = arith.constant 0 : i32
    %c0_i32_1 = arith.constant 0 : i32
    return %c0_i32, %c0_i32_0 : i32, i32
  }
  func.func @transform_3(%arg0: i32) -> (i32, i32) {
    %c0_i32 = arith.constant 0 : i32
    %c0_i32_0 = arith.constant 0 : i32
    %c0_i32_1 = arith.constant 0 : i32
    return %c0_i32, %c0_i32_0 : i32, i32
  }
  func.func @transform_4(%arg0: i32) -> (i32, i32) {
    %c0_i32 = arith.constant 0 : i32
    %c0_i32_0 = arith.constant 0 : i32
    %c0_i32_1 = arith.constant 0 : i32
    return %c0_i32, %c0_i32_0 : i32, i32
  }
  func.func @transform_5(%arg0: i32) -> (i32, i32) {
    %c0_i32 = arith.constant 0 : i32
    %c0_i32_0 = arith.constant 0 : i32
    %c0_i32_1 = arith.constant 0 : i32
    return %c0_i32, %c0_i32_0 : i32, i32
  }
  func.func @transform_6(%arg0: i32) -> (i32, i32) {
    %c0_i32 = arith.constant 0 : i32
    %c0_i32_0 = arith.constant 0 : i32
    %c0_i32_1 = arith.constant 0 : i32
    return %c0_i32, %c0_i32_0 : i32, i32
  }
  func.func @transform_7(%arg0: i32) -> (i32, i32) {
    %c0_i32 = arith.constant 0 : i32
    %c0_i32_0 = arith.constant 0 : i32
    %c0_i32_1 = arith.constant 0 : i32
    return %c0_i32, %c0_i32_0 : i32, i32
  }
  func.func @transform_8(%arg0: i32) -> (i32, i32) {
    %c0_i32 = arith.constant 0 : i32
    %c0_i32_0 = arith.constant 0 : i32
    %c0_i32_1 = arith.constant 0 : i32
    return %c0_i32, %c0_i32_0 : i32, i32
  }
  func.func @transform_9(%arg0: i32) -> (i32, i32) {
    %c0_i32 = arith.constant 0 : i32
    %c0_i32_0 = arith.constant 0 : i32
    return %arg0, %c0_i32 : i32, i32
  }
}

</mosaic_0001>

<bundles_post_ra>
// kernel: tpu_custom_call.1
= control target key start
LH: loop header
LB: loop body
LE: loop exit
PB: predicated region body
PF: predicated region fallthrough
CT: control target
= control target key end

     0   :  { %14 = vsyncpa [#allocation3], 0  ;;  %s1870_s0 = inlined_call_operand.hbm [shape: f32[8,784], index: 0, kind: input, shape index: {}]   ;;  %s1871_s1 = inlined_call_operand.hbm [shape: bf16[784,128], index: 1, kind: input, shape index: {}]   ;;  %s1872_s2 = inlined_call_operand.hbm [shape: f32[1,128], index: 2, kind: input, shape index: {}]   ;;  %s1873_s3 = inlined_call_operand.hbm [shape: bf16[128,128], index: 3, kind: input, shape index: {}]   ;;  %s1874_s4 = inlined_call_operand.hbm [shape: f32[1,128], index: 4, kind: input, shape index: {}]   ;;  %s1875_s5 = inlined_call_operand.hbm [shape: bf16[128,128], index: 5, kind: input, shape index: {}]   ;;  %s1876_s6 = inlined_call_operand.hbm [shape: f32[1,128], index: 6, kind: input, shape index: {}]   ;;  %s1877_s7 = inlined_call_operand.hbm [shape: bf16[128,128], index: 7, kind: input, shape index: {}]   ;;  %s1878_s8 = inlined_call_operand.hbm [shape: f32[1,128], index: 8, kind: input, shape index: {}]   ;;  %s1879_s9 = inlined_call_operand.hbm [shape: bf16[8,128], index: 9, kind: output, shape index: {}]  }
   0x1   :  { %15 = vsyncpa [#allocation6], 0 }
   0x2   :  { %16 = vsyncpa [#allocation9], 0 }
   0x3   :  { %17 = vsyncpa [#allocation12], 0 }
   0x4   :  { %18 = vsyncpa [#allocation15], 0 }
   0x5   :  { %19 = vsyncpa [#allocation4], 0  ;;  %s1641_s30 = smov [#allocation5]   ;;  %s1409_s13 = scalar_lea.hbm %s1871_s1, 6272 }
   0x6   :  { %s35_s10 = sshll.u32 %s1641_s30, 4  ;;  %p1410_p0 = scmp.ne.s32.totalorder %s1871_s1, %s1409_s13  ;;  %s36_s10 = int_to_ptr.vmem [resolvable:$true] %s35_s10 }
   0x7   :  { %p1413_p1 = scmp.lt.u32.totalorder %s1409_s13, %s1871_s1 }
   0x9   :  { %p1415_p2 = pnand %p1413_p1, %p1410_p0 }
   0xb   :  { %1418 = shalt.err (!%p1415_p2)
}
   0xc   :  { %s1419_s18 = scalar_lea.vmem %s36_s10, 6272  ;;  %p1424_p4 = scmp.lt.s32.totalorder %s36_s10, %s36_s10 }
   0xd   :  { %p1420_p3 = scmp.ne.s32.totalorder %s36_s10, %s1419_s18  ;;  %p1425_p5 = scmp.lt.s32.totalorder %s1419_s18, %s1419_s18 }
   0xf   :  { %p1426_p6 = por %p1425_p5, %p1424_p4 }
  0x11   :  { %p1427_p7 = pnand %p1426_p6, %p1420_p3 }
  0x13   :  { %1430 = shalt.err (!%p1427_p7)
}
  0x14   :  { %s1642_s19 = smov 64   ;;  %s1643_s20 = smov 4  }
  0x15   :  { %41 = dma.hbm_to_vmem [thread:$0]  %s1871_s1, 6272, %s36_s10, [#allocation6], %s1642_s19, %s1642_s19, %s1643_s20  }
  0x16   :  { %s1644_s23 = smov [#allocation8]   ;;  %s1645_s25 = smov [#allocation11]  }
  0x17   :  { %s57_s24 = sshll.u32 %s1644_s23, 4  ;;  %s79_s26 = sshll.u32 %s1645_s25, 4  ;;  %s58_s24 = int_to_ptr.vmem [resolvable:$true] %s57_s24  ;;  %s80_s26 = int_to_ptr.vmem [resolvable:$true] %s79_s26 }
  0x18   :  { %s1431_s29 = scalar_lea.hbm %s1873_s3, 1024 }
  0x19   :  { %p1432_p8 = scmp.ne.s32.totalorder %s1873_s3, %s1431_s29  ;;  %p1435_p9 = scmp.lt.u32.totalorder %s1431_s29, %s1873_s3 }
  0x1b   :  { %p1437_p10 = pnand %p1435_p9, %p1432_p8 }
  0x1d   :  { %1440 = shalt.err (!%p1437_p10)
}
  0x1e   :  { %s1441_s1 = scalar_lea.vmem %s58_s24, 1024  ;;  %p1446_p12 = scmp.lt.s32.totalorder %s58_s24, %s58_s24 }
  0x1f   :  { %p1442_p11 = scmp.ne.s32.totalorder %s58_s24, %s1441_s1  ;;  %p1447_p13 = scmp.lt.s32.totalorder %s1441_s1, %s1441_s1 }
  0x21   :  { %p1448_p0 = por %p1447_p13, %p1446_p12 }
  0x23   :  { %p1449_p1 = pnand %p1448_p0, %p1442_p11 }
  0x25   :  { %1452 = shalt.err (!%p1449_p1)
}
  0x26   :  { %63 = dma.hbm_to_vmem [thread:$0]  %s1873_s3, 1024, %s58_s24, [#allocation9], %s1642_s19, %s1642_s19, %s1643_s20  }
  0x27   :  { %s1453_s17 = scalar_lea.hbm %s1875_s5, 1024 }
  0x28   :  { %p1454_p2 = scmp.ne.s32.totalorder %s1875_s5, %s1453_s17  ;;  %p1457_p3 = scmp.lt.u32.totalorder %s1453_s17, %s1875_s5 }
  0x2a   :  { %p1459_p4 = pnand %p1457_p3, %p1454_p2 }
  0x2c   :  { %1462 = shalt.err (!%p1459_p4)
}
  0x2d   :  { %s1463_s25 = scalar_lea.vmem %s80_s26, 1024  ;;  %p1468_p6 = scmp.lt.s32.totalorder %s80_s26, %s80_s26 }
  0x2e   :  { %p1464_p5 = scmp.ne.s32.totalorder %s80_s26, %s1463_s25  ;;  %p1469_p7 = scmp.lt.s32.totalorder %s1463_s25, %s1463_s25 }
  0x30   :  { %p1470_p8 = por %p1469_p7, %p1468_p6 }
  0x32   :  { %p1471_p9 = pnand %p1470_p8, %p1464_p5 }
  0x34   :  { %1474 = shalt.err (!%p1471_p9)
}
  0x35   :  { %85 = dma.hbm_to_vmem [thread:$0]  %s1875_s5, 1024, %s80_s26, [#allocation12], %s1642_s19, %s1642_s19, %s1643_s20  }
  0x36   :  { %s1646_s27 = smov [#allocation14]   ;;  %s1647_s29 = smov [#allocation2]  }
  0x37   :  { %s101_s28 = sshll.u32 %s1646_s27, 4  ;;  %s26_s30 = sshll.u32 %s1647_s29, 4  ;;  %s102_s28 = int_to_ptr.vmem [resolvable:$true] %s101_s28  ;;  %s27_s30 = int_to_ptr.vmem [resolvable:$true] %s26_s30 }
  0x38   :  { %s1475_s13 = scalar_lea.hbm %s1877_s7, 1024 }
  0x39   :  { %p1476_p10 = scmp.ne.s32.totalorder %s1877_s7, %s1475_s13  ;;  %p1479_p11 = scmp.lt.u32.totalorder %s1475_s13, %s1877_s7 }
  0x3b   :  { %p1481_p12 = pnand %p1479_p11, %p1476_p10 }
  0x3d   :  { %1484 = shalt.err (!%p1481_p12)
}
  0x3e   :  { %s1485_s5 = scalar_lea.vmem %s102_s28, 1024  ;;  %p1490_p0 = scmp.lt.s32.totalorder %s102_s28, %s102_s28 }
  0x3f   :  { %p1486_p13 = scmp.ne.s32.totalorder %s102_s28, %s1485_s5  ;;  %p1491_p1 = scmp.lt.s32.totalorder %s1485_s5, %s1485_s5 }
  0x41   :  { %p1492_p2 = por %p1491_p1, %p1490_p0 }
  0x43   :  { %p1493_p3 = pnand %p1492_p2, %p1486_p13 }
  0x45   :  { %1496 = shalt.err (!%p1493_p3)
}
  0x46   :  { %107 = dma.hbm_to_vmem [thread:$0]  %s1877_s7, 1024, %s102_s28, [#allocation15], %s1642_s19, %s1642_s19, %s1643_s20  }
  0x47   :  { %s1497_s21 = scalar_lea.hbm %s1870_s0, 896 }
  0x48   :  { %p1498_p4 = scmp.ne.s32.totalorder %s1870_s0, %s1497_s21  ;;  %p1501_p5 = scmp.lt.u32.totalorder %s1497_s21, %s1870_s0 }
  0x4a   :  { %p1503_p6 = pnand %p1501_p5, %p1498_p4 }
  0x4c   :  { %1506 = shalt.err (!%p1503_p6)
}
  0x4d   :  { %s1507_s24 = scalar_lea.vmem %s27_s30, 896  ;;  %p1512_p8 = scmp.lt.s32.totalorder %s27_s30, %s27_s30 }
  0x4e   :  { %p1508_p7 = scmp.ne.s32.totalorder %s27_s30, %s1507_s24  ;;  %p1513_p9 = scmp.lt.s32.totalorder %s1507_s24, %s1507_s24 }
  0x50   :  { %p1514_p10 = por %p1513_p9, %p1512_p8 }
  0x52   :  { %p1515_p11 = pnand %p1514_p10, %p1508_p7 }
  0x54   :  { %1518 = shalt.err (!%p1515_p11)
}
  0x55   :  { %29 = dma.hbm_to_vmem [thread:$0]  %s1870_s0, 896, %s27_s30, [#allocation3]  }
  0x56   :  { %s1648_s20 = smov [#allocation7]   ;;  %s1649_s28 = smov [#allocation10]  }
  0x57   :  { %s48_s27 = sshll.u32 %s1648_s20, 4  ;;  %s70_s29 = sshll.u32 %s1649_s28, 4  ;;  %s49_s27 = int_to_ptr.vmem [resolvable:$true] %s48_s27  ;;  %s71_s29 = int_to_ptr.vmem [resolvable:$true] %s70_s29 }
  0x58   :  { %s1519_s13 = scalar_lea.hbm %s1872_s2, 16 }
  0x59   :  { %p1520_p12 = scmp.ne.s32.totalorder %s1872_s2, %s1519_s13  ;;  %p1523_p13 = scmp.lt.u32.totalorder %s1519_s13, %s1872_s2 }
  0x5b   :  { %p1525_p0 = pnand %p1523_p13, %p1520_p12 }
  0x5d   :  { %1528 = shalt.err (!%p1525_p0)
}
  0x5e   :  { %s1529_s0 = scalar_lea.vmem %s49_s27, 16  ;;  %s1533_s30 = scalar_lea.vmem %s49_s27, 32 }
  0x5f   :  { %p1530_p1 = scmp.ne.s32.totalorder %s49_s27, %s1529_s0  ;;  %p1534_p2 = scmp.lt.s32.totalorder %s49_s27, %s49_s27 }
  0x60   :  { %p1535_p3 = scmp.lt.s32.totalorder %s1533_s30, %s1529_s0 }
  0x62   :  { %p1536_p4 = por %p1535_p3, %p1534_p2 }
  0x64   :  { %p1537_p5 = pnand %p1536_p4, %p1530_p1 }
  0x66   :  { %1540 = shalt.err (!%p1537_p5)
}
  0x67   :  { %51 = dma.hbm_to_vmem [thread:$0]  %s1872_s2, 16, %s49_s27, [#allocation6]  }
  0x68   :  { %s1541_s18 = scalar_lea.hbm %s1874_s4, 16 }
  0x69   :  { %p1542_p6 = scmp.ne.s32.totalorder %s1874_s4, %s1541_s18  ;;  %p1545_p7 = scmp.lt.u32.totalorder %s1541_s18, %s1874_s4 }
  0x6b   :  { %p1547_p8 = pnand %p1545_p7, %p1542_p6 }
  0x6d   :  { %1550 = shalt.err (!%p1547_p8)
}
  0x6e   :  { %s1551_s3 = scalar_lea.vmem %s71_s29, 16  ;;  %s1555_s24 = scalar_lea.vmem %s71_s29, 32 }
  0x6f   :  { %p1552_p9 = scmp.ne.s32.totalorder %s71_s29, %s1551_s3  ;;  %p1556_p10 = scmp.lt.s32.totalorder %s71_s29, %s71_s29 }
  0x70   :  { %p1557_p11 = scmp.lt.s32.totalorder %s1555_s24, %s1551_s3 }
  0x72   :  { %p1558_p12 = por %p1557_p11, %p1556_p10 }
  0x74   :  { %p1559_p13 = pnand %p1558_p12, %p1552_p9 }
  0x76   :  { %1562 = shalt.err (!%p1559_p13)
}
  0x77   :  { %73 = dma.hbm_to_vmem [thread:$0]  %s1874_s4, 16, %s71_s29, [#allocation9]  }
  0x78   :  { %s1650_s19 = smov [#allocation13]   ;;  %s1651_s27 = smov [#allocation16]  }
  0x79   :  { %s92_s20 = sshll.u32 %s1650_s19, 4  ;;  %s114_s28 = sshll.u32 %s1651_s27, 4  ;;  %s93_s20 = int_to_ptr.vmem [resolvable:$true] %s92_s20  ;;  %s115_s28 = int_to_ptr.vmem [resolvable:$true] %s114_s28 }
  0x7a   :  { %s1563_s13 = scalar_lea.hbm %s1876_s6, 16 }
  0x7b   :  { %p1564_p0 = scmp.ne.s32.totalorder %s1876_s6, %s1563_s13  ;;  %p1567_p1 = scmp.lt.u32.totalorder %s1563_s13, %s1876_s6 }
  0x7d   :  { %p1569_p2 = pnand %p1567_p1, %p1564_p0 }
  0x7f   :  { %1572 = shalt.err (!%p1569_p2)
}
  0x80   :  { %s1573_s4 = scalar_lea.vmem %s93_s20, 16  ;;  %s1577_s29 = scalar_lea.vmem %s93_s20, 32 }
  0x81   :  { %p1574_p3 = scmp.ne.s32.totalorder %s93_s20, %s1573_s4  ;;  %p1578_p4 = scmp.lt.s32.totalorder %s93_s20, %s93_s20 }
  0x82   :  { %p1579_p5 = scmp.lt.s32.totalorder %s1577_s29, %s1573_s4 }
  0x84   :  { %p1580_p6 = por %p1579_p5, %p1578_p4 }
  0x86   :  { %p1581_p7 = pnand %p1580_p6, %p1574_p3 }
  0x88   :  { %1584 = shalt.err (!%p1581_p7)
}
  0x89   :  { %95 = dma.hbm_to_vmem [thread:$0]  %s1876_s6, 16, %s93_s20, [#allocation12]  }
  0x8a   :  { %s1585_s16 = scalar_lea.hbm %s1878_s8, 16 }
  0x8b   :  { %p1586_p8 = scmp.ne.s32.totalorder %s1878_s8, %s1585_s16  ;;  %p1589_p9 = scmp.lt.u32.totalorder %s1585_s16, %s1878_s8 }
  0x8d   :  { %p1591_p10 = pnand %p1589_p9, %p1586_p8 }
  0x8f   :  { %1594 = shalt.err (!%p1591_p10)
}
  0x90   :  { %s1595_s23 = scalar_lea.vmem %s115_s28, 16  ;;  %s1599_s25 = scalar_lea.vmem %s115_s28, 32 }
  0x91   :  { %p1596_p11 = scmp.ne.s32.totalorder %s115_s28, %s1595_s23  ;;  %p1600_p12 = scmp.lt.s32.totalorder %s115_s28, %s115_s28 }
  0x92   :  { %p1601_p13 = scmp.lt.s32.totalorder %s1599_s25, %s1595_s23 }
  0x94   :  { %p1602_p0 = por %p1601_p13, %p1600_p12 }
  0x96   :  { %p1603_p1 = pnand %p1602_p0, %p1596_p11 }
  0x98   :  { %1606 = shalt.err (!%p1603_p1)
}
  0x99   :  { %117 = dma.hbm_to_vmem [thread:$0]  %s1878_s8, 16, %s115_s28, [#allocation15]  }
  0x9a   :  { %1629 = dma.done.wait [#allocation3], 896  }
  0x9b   :  { %1630 = vsyncadd [#allocation3], 4294966400 }
  0x9c   :  { %1631 = dma.done.wait [#allocation6], 6288  }
  0x9d   :  { %1632 = vsyncadd [#allocation6], 4294961008 }
  0x9e   :  { %1633 = dma.done.wait [#allocation9], 1040  }
  0x9f   :  { %1634 = vsyncadd [#allocation9], 4294966256 }
  0xa0   :  { %1635 = dma.done.wait [#allocation12], 1040  }
  0xa1   :  { %1636 = vsyncadd [#allocation12], 4294966256 }
  0xa2   :  { %1637 = dma.done.wait [#allocation15], 1040  }
  0xa3   :  { %1638 = vsyncadd [#allocation15], 4294966256  ;;  %v1336_v0 = vld [vmem:[#allocation5 + $0x40] sm:$0xff]   ;;  %v1340_v4 = vld [vmem:[#allocation5 + $0x48] sm:$0xff]   ;;  %v1652_v44 = vmov 0.0   ;;  %vm1653_vm0 = vmmov 0  }
  0xa4   :  { %v1337_v1 = vld [vmem:[#allocation5] sm:$0xff]   ;;  %1161 = vmatprep.subr.bf16.mxu0 %v1336_v0  ;;  %v1341_v5 = vld [vmem:[#allocation5 + $0x8] sm:$0xff]   ;;  %v1344_v8 = vld [vmem:[#allocation5 + $0x50] sm:$0xff]   ;;  %vm559_vm1 = vcmask 130048   ;;  %s1654_s8 = smov [#allocation17]  }
  0xa5   :  { %v1338_v2 = vld [vmem:[#allocation5 + $0xc0] sm:$0xff]   ;;  %1162 = vmatpush3.bf16.msra.mxu0 %v1337_v1  ;;  %v1342_v6 = vld [vmem:[#allocation5 + $0xc8] sm:$0xff]   ;;  %v1345_v9 = vld [vmem:[#allocation5 + $0x10] sm:$0xff]   ;;  %s1070_s24 = sshll.u32 %s1654_s8, 4  ;;  %s1071_s24 = int_to_ptr.vmem [resolvable:$true] %s1070_s24 }
  0xa6   :  { %v1339_v3 = vld [vmem:[#allocation5 + $0x80] sm:$0xff]   ;;  %1183 = vmatprep.subr.bf16.mxu1 %v1338_v2  ;;  %1163 = vmatprep.subr.bf16.mxu0 %v1340_v4  ;;  %v1343_v7 = vld [vmem:[#allocation5 + $0x88] sm:$0xff]   ;;  %v1346_v10 = vld [vmem:[#allocation5 + $0xd0] sm:$0xff]   ;;  %s1607_s2 = scalar_lea.vmem %s1071_s24, 64  ;;  %p1612_p3 = scmp.lt.s32.totalorder %s1071_s24, %s1071_s24 }
  0xa7   :  { %1184 = vmatpush3.bf16.msra.mxu1 %v1339_v3  ;;  %v1347_v11 = vld [vmem:[#allocation5 + $0x90] sm:$0xff]   ;;  %v1348_v12 = vld [vmem:[#allocation5 + $0x58] sm:$0xff]   ;;  %v1352_v16 = vld [vmem:[#allocation5 + $0x60] sm:$0xff]   ;;  %p1608_p2 = scmp.ne.s32.totalorder %s1071_s24, %s1607_s2  ;;  %p1613_p4 = scmp.lt.s32.totalorder %s1607_s2, %s1607_s2 }
  0xa8   :  { %1185 = vmatprep.subr.bf16.mxu1 %v1342_v6  ;;  %v1349_v13 = vld [vmem:[#allocation5 + $0x18] sm:$0xff]   ;;  %v1353_v17 = vld [vmem:[#allocation5 + $0x20] sm:$0xff]   ;;  %v1356_v20 = vld [vmem:[#allocation5 + $0x68] sm:$0xff]  }
  0xa9   :  { %1164 = vmatpush3.bf16.msra.mxu0 %v1341_v5  ;;  %v1350_v14 = vld [vmem:[#allocation5 + $0xd8] sm:$0xff]   ;;  %v1354_v18 = vld [vmem:[#allocation5 + $0xe0] sm:$0xff]   ;;  %v1357_v21 = vld [vmem:[#allocation5 + $0x28] sm:$0xff]   ;;  %p1614_p5 = por %p1613_p4, %p1612_p3 }
  0xaa   :  { %1165 = vmatprep.subr.bf16.mxu0 %v1344_v8  ;;  %v1351_v15 = vld [vmem:[#allocation5 + $0x98] sm:$0xff]   ;;  %v1355_v19 = vld [vmem:[#allocation5 + $0xa0] sm:$0xff]   ;;  %v1358_v22 = vld [vmem:[#allocation5 + $0xe8] sm:$0xff]  }
  0xab   :  { %1186 = vmatpush3.bf16.msra.mxu1 %v1343_v7  ;;  %v1359_v23 = vld [vmem:[#allocation5 + $0xa8] sm:$0xff]   ;;  %v1360_v24 = vld [vmem:[#allocation5 + $0x70] sm:$0xff]   ;;  %v1364_v28 = vld [vmem:[#allocation5 + $0x78] sm:$0xff]   ;;  %p1615_p6 = pnand %p1614_p5, %p1608_p2 }
  0xac   :  { %1187 = vmatprep.subr.bf16.mxu1 %v1346_v10  ;;  %v1361_v25 = vld [vmem:[#allocation5 + $0x30] sm:$0xff]   ;;  %v1365_v29 = vld [vmem:[#allocation5 + $0x38] sm:$0xff]   ;;  %v146_v34 = vld [vmem:[#allocation2] sm:$0xff] }
  0xad   :  { %1166 = vmatpush3.bf16.msra.mxu0 %v1345_v9  ;;  %v1362_v26 = vld [vmem:[#allocation5 + $0xf0] sm:$0xff]   ;;  %v1366_v30 = vld [vmem:[#allocation5 + $0xf8] sm:$0xff]   ;;  %v153_v35 = vpack.c.bf16 %v146_v34, %v146_v34  ;;  %v1368_v36 = vld [vmem:[#allocation5 + $0x140] sm:$0xff]  }
  0xae   :  { %1167 = vmatprep.subr.bf16.mxu0 %v1348_v12  ;;  %v1363_v27 = vld [vmem:[#allocation5 + $0xb0] sm:$0xff]   ;;  %v1367_v33 = vld [vmem:[#allocation5 + $0xb8] sm:$0xff]   ;;  %v149_v37 = vld [vmem:[#allocation2 + $0x18] sm:$0xff] }
  0xaf   :  { %1188 = vmatpush3.bf16.msra.mxu1 %v1347_v11  ;;  %v147_v31 = vld [vmem:[#allocation2 + $0x8] sm:$0xff]  ;;  %v156_v38 = vpack.c.bf16 %v149_v37, %v149_v37  ;;  %v1369_v39 = vld [vmem:[#allocation5 + $0x100] sm:$0xff]   ;;  %v148_v40 = vld [vmem:[#allocation2 + $0x10] sm:$0xff] }
  0xb0   :  { %1189 = vmatprep.subr.bf16.mxu1 %v1350_v14  ;;  %v154_v32 = vpack.c.bf16 %v147_v31, %v147_v31  ;;  %v155_v41 = vpack.c.bf16 %v148_v40, %v148_v40  ;;  %v1370_v42 = vld [vmem:[#allocation5 + $0x148] sm:$0xff]   ;;  %v1372_v45 = vld [vmem:[#allocation5 + $0x150] sm:$0xff]   ;;  %v1374_v47 = vld [vmem:[#allocation5 + $0x158] sm:$0xff]  }
  0xb1   :  { %1168 = vmatpush3.bf16.msra.mxu0 %v1349_v13  ;;  %635 = vmatprep.mubr.bf16.mxu1 %v156_v38  ;;  %v1371_v43 = vld [vmem:[#allocation5 + $0x108] sm:$0xff]   ;;  %v1373_v46 = vld [vmem:[#allocation5 + $0x110] sm:$0xff]   ;;  %v1375_v48 = vld [vmem:[#allocation5 + $0x118] sm:$0xff]  }
  0xb2   :  { %1169 = vmatprep.subr.bf16.mxu0 %v1352_v16  ;;  %595 = vmatprep.mubr.bf16.mxu0 %v154_v32  ;;  %v1376_v49 = vld [vmem:[#allocation5 + $0x160] sm:$0xff]   ;;  %v1378_v51 = vld [vmem:[#allocation5 + $0x168] sm:$0xff]   ;;  %v151_v54 = vld [vmem:[#allocation2 + $0x28] sm:$0xff] }
  0xb3   :  { %1190 = vmatpush3.bf16.msra.mxu1 %v1351_v15  ;;  %v1377_v50 = vld [vmem:[#allocation5 + $0x120] sm:$0xff]   ;;  %v1379_v52 = vld [vmem:[#allocation5 + $0x128] sm:$0xff]   ;;  %v1380_v55 = vld [vmem:[#allocation5 + $0x170] sm:$0xff]   ;;  %v158_v56 = vpack.c.bf16 %v151_v54, %v151_v54 }
  0xb4   :  { %1191 = vmatprep.subr.bf16.mxu1 %v1354_v18  ;;  %v1384_v53 = vld [vmem:[#allocation5 + $0x180] sm:$0xff]   ;;  %v152_v57 = vld [vmem:[#allocation2 + $0x30] sm:$0xff]  ;;  %v1381_v59 = vld [vmem:[#allocation5 + $0x130] sm:$0xff]  }
  0xb5   :  { %1170 = vmatpush3.bf16.msra.mxu0 %v1353_v17  ;;  %v159_v58 = vpack.c.bf16 %v152_v57, %v152_v57  ;;  %v1382_v60 = vld [vmem:[#allocation5 + $0x178] sm:$0xff]   ;;  %v150_v62 = vld [vmem:[#allocation2 + $0x20] sm:$0xff] }
  0xb6   :  { %1171 = vmatprep.subr.bf16.mxu0 %v1356_v20  ;;  %v1383_v61 = vld [vmem:[#allocation5 + $0x138] sm:$0xff]   ;;  %v157_v63 = vpack.c.bf16 %v150_v62, %v150_v62  ;;  %v1385_v0 = vld [vmem:[#allocation8] sm:$0xff]   ;;  %v1388_v3 = vld [vmem:[#allocation8 + $0x18] sm:$0xff]  }
  0xb7   :  { %1192 = vmatpush3.bf16.msra.mxu1 %v1355_v19  ;;  %v1386_v1 = vld [vmem:[#allocation8 + $0x8] sm:$0xff]   ;;  %v1387_v2 = vld [vmem:[#allocation8 + $0x10] sm:$0xff]   ;;  %v1389_v4 = vld [vmem:[#allocation8 + $0x20] sm:$0xff]  }
  0xb8   :  { %1193 = vmatprep.subr.bf16.mxu1 %v1358_v22  ;;  %v1390_v5 = vld [vmem:[#allocation8 + $0x28] sm:$0xff]   ;;  %v1391_v6 = vld [vmem:[#allocation8 + $0x30] sm:$0xff]   ;;  %v1392_v7 = vld [vmem:[#allocation8 + $0x38] sm:$0xff]  }
  0xb9   :  { %1172 = vmatpush3.bf16.msra.mxu0 %v1357_v21  ;;  %v1393_v8 = vld [vmem:[#allocation11] sm:$0xff]   ;;  %v1394_v9 = vld [vmem:[#allocation11 + $0x8] sm:$0xff]   ;;  %v1395_v10 = vld [vmem:[#allocation11 + $0x10] sm:$0xff]  }
  0xba   :  { %1173 = vmatprep.subr.bf16.mxu0 %v1360_v24  ;;  %v1396_v11 = vld [vmem:[#allocation11 + $0x18] sm:$0xff]   ;;  %v1397_v12 = vld [vmem:[#allocation11 + $0x20] sm:$0xff]   ;;  %v1398_v13 = vld [vmem:[#allocation11 + $0x28] sm:$0xff]  }
  0xbb   :  { %1194 = vmatpush3.bf16.msra.mxu1 %v1359_v23  ;;  %v1083_v15 = vld [vmem:[#allocation7] ss:$0 sm:$0xff]  ;;  %v1399_v40 = vld [vmem:[#allocation11 + $0x30] sm:$0xff]  }
  0xbc   :  { %1195 = vmatprep.subr.bf16.mxu1 %v1362_v26  ;;  %v1407_v57 = vld [vmem:[#allocation14 + $0x30] sm:$0xff]  }
  0xbd   :  { %1174 = vmatpush3.bf16.msra.mxu0 %v1361_v25 }
  0xbe   :  { %1175 = vmatprep.subr.bf16.mxu0 %v1364_v28 }
  0xbf   :  { %1196 = vmatpush3.bf16.msra.mxu1 %v1363_v27 }
  0xc0   :  { %1197 = vmatprep.subr.bf16.mxu1 %v1366_v30 }
  0xc1   :  { %1176 = vmatpush3.bf16.msra.mxu0 %v1365_v29 }
  0xc2   :  { %1205 = vmatprep.subr.bf16.mxu0 %v1368_v36 }
  0xc3   :  { %1198 = vmatpush3.bf16.msra.mxu1 %v1367_v33 }
  0xc4   :  { %596 = vmatmul.mubr.bf16.vlgmr.msra.gmra.mrb[0].mxu0 %v153_v35  ;;  %1256 = vmatprep.subr.bf16.mxu1 %v1652_v44 }
  0xc5   :  { %1206 = vmatpush3.bf16.msra.mxu0 %v1369_v39  ;;  %675 = vmatprep.mubr.bf16.mxu0 %v158_v56 }
  0xc6   :  { %636 = vmatmul.mubr.bf16.vlgmr.msra.gmra.mrb[0].mxu1 %v155_v41  ;;  %1207 = vmatprep.subr.bf16.mxu0 %v1370_v42  ;;  %v1400_v41 = vld [vmem:[#allocation11 + $0x38] sm:$0xff]   ;;  %v1401_v42 = vld [vmem:[#allocation14] sm:$0xff]  }
  0xc7   :  { %1258 = vmatprep.mubr.msk.bf16.mxu1 %vm1653_vm0, %v1652_v44  ;;  %1257 = vmatpush3.bf16.msra.mxu1 %v1384_v53 }
  0xc8   :  { %1262 = vmatprep.subr.bf16.mxu1 %v1652_v44 }
  0xc9   :  { %1208 = vmatpush3.bf16.msra.mxu0 %v1371_v43  ;;  %v1402_v43 = vld [vmem:[#allocation14 + $0x8] sm:$0xff]  }
  0xca   :  { %1209 = vmatprep.subr.bf16.mxu0 %v1372_v45  ;;  %v1403_v45 = vld [vmem:[#allocation14 + $0x10] sm:$0xff]  }
  0xcd   :  { %1210 = vmatpush3.bf16.msra.mxu0 %v1373_v46  ;;  %v1404_v46 = vld [vmem:[#allocation14 + $0x18] sm:$0xff]  }
  0xce   :  { %1211 = vmatprep.subr.bf16.mxu0 %v1374_v47  ;;  %1259 = vmatmul.mubr.msk.bf16.vlgmr.msra.gmra.mrb[4].mxu1 %vm559_vm1, %v159_v58  ;;  %v1405_v47 = vld [vmem:[#allocation14 + $0x20] sm:$0xff]   ;;  %v1408_v58 = vld [vmem:[#allocation14 + $0x38] sm:$0xff]  }
  0xcf   :  { %1278 = vmatprep.mubr.msk.bf16.mxu1 %vm1653_vm0, %v1652_v44  ;;  %1263 = vmatpush3.bf16.msra.mxu1 %v1385_v0 }
  0xd0   :  { %1264 = vmatprep.subr.bf16.mxu1 %v1652_v44 }
  0xd1   :  { %1212 = vmatpush3.bf16.msra.mxu0 %v1375_v48  ;;  %v1406_v48 = vld [vmem:[#allocation14 + $0x28] sm:$0xff]  }
  0xd2   :  { %1213 = vmatprep.subr.bf16.mxu0 %v1376_v49  ;;  %v1134_v49 = vld [vmem:[#allocation10] ss:$0 sm:$0xff] }
  0xd3   :  { %1265 = vmatpush3.bf16.msra.mxu1 %v1386_v1 }
  0xd4   :  { %1266 = vmatprep.subr.bf16.mxu1 %v1652_v44 }
  0xd5   :  { %1214 = vmatpush3.bf16.msra.mxu0 %v1377_v50 }
  0xd6   :  { %1215 = vmatprep.subr.bf16.mxu0 %v1378_v51 }
  0xd7   :  { %1267 = vmatpush3.bf16.msra.mxu1 %v1387_v2 }
  0xd8   :  { %1268 = vmatprep.subr.bf16.mxu1 %v1652_v44 }
  0xd9   :  { %1216 = vmatpush3.bf16.msra.mxu0 %v1379_v52 }
  0xda   :  { %1217 = vmatprep.subr.bf16.mxu0 %v1380_v55 }
  0xdb   :  { %1269 = vmatpush3.bf16.msra.mxu1 %v1388_v3  ;;  %v1152_v3 = vld [vmem:[#allocation16] ss:$0 sm:$0xff] }
  0xdc   :  { %1270 = vmatprep.subr.bf16.mxu1 %v1652_v44 }
  0xdd   :  { %1218 = vmatpush3.bf16.msra.mxu0 %v1381_v59  ;;  %v1143_v59 = vld [vmem:[#allocation13] ss:$0 sm:$0xff] }
  0xde   :  { %1219 = vmatprep.subr.bf16.mxu0 %v1382_v60 }
  0xdf   :  { %1271 = vmatpush3.bf16.msra.mxu1 %v1389_v4 }
  0xe0   :  { %1272 = vmatprep.subr.bf16.mxu1 %v1652_v44 }
  0xe1   :  { %1220 = vmatpush3.bf16.msra.mxu0 %v1383_v61 }
  0xe2   :  { %1282 = vmatprep.subr.bf16.mxu0 %v1652_v44 }
  0xe3   :  { %1273 = vmatpush3.bf16.msra.mxu1 %v1390_v5 }
  0xe4   :  { %676 = vmatmul.mubr.bf16.vlgmr.msra.gmra.mrb[4].mxu0 %v157_v63  ;;  %1274 = vmatprep.subr.bf16.mxu1 %v1652_v44 }
  0xe5   :  { %1298 = vmatprep.mubr.msk.bf16.mxu0 %vm1653_vm0, %v1652_v44  ;;  %1283 = vmatpush3.bf16.msra.mxu0 %v1393_v8 }
  0xe6   :  { %1284 = vmatprep.subr.bf16.mxu0 %v1652_v44 }
  0xe7   :  { %1275 = vmatpush3.bf16.msra.mxu1 %v1391_v6 }
  0xe8   :  { %1276 = vmatprep.subr.bf16.mxu1 %v1652_v44 }
  0xe9   :  { %1285 = vmatpush3.bf16.msra.mxu0 %v1394_v9 }
  0xea   :  { %1286 = vmatprep.subr.bf16.mxu0 %v1652_v44 }
  0xeb   :  { %1277 = vmatpush3.bf16.msra.mxu1 %v1392_v7 }
  0xec   :  { %1302 = vmatprep.subr.bf16.mxu1 %v1652_v44 }
  0xed   :  { %1287 = vmatpush3.bf16.msra.mxu0 %v1395_v10 }
  0xee   :  { %1288 = vmatprep.subr.bf16.mxu0 %v1652_v44 }
  0xf1   :  { %1289 = vmatpush3.bf16.msra.mxu0 %v1396_v11 }
  0xf2   :  { %1290 = vmatprep.subr.bf16.mxu0 %v1652_v44 }
  0xf5   :  { %1291 = vmatpush3.bf16.msra.mxu0 %v1397_v12 }
  0xf6   :  { %1292 = vmatprep.subr.bf16.mxu0 %v1652_v44 }
  0xf9   :  { %1293 = vmatpush3.bf16.msra.mxu0 %v1398_v13 }
  0xfa   :  { %1294 = vmatprep.subr.bf16.mxu0 %v1652_v44 }
  0xfd   :  { %1295 = vmatpush3.bf16.msra.mxu0 %v1399_v40 }
  0xfe   :  { %1296 = vmatprep.subr.bf16.mxu0 %v1652_v44 }
 0x101   :  { %1297 = vmatpush3.bf16.msra.mxu0 %v1400_v41 }
 0x197   :  { %v1177_v14 = vpop.f32.mrb[0].mxu0 }
 0x198   :  { %v1178_v16 = vpop.f32.mrb[1].mxu0 }
 0x199   :  { %v1179_v17 = vadd.f32 %v1178_v16, %v1177_v14  ;;  %v1180_v18 = vpop.f32.mrb[2].mxu0  ;;  %v1199_v19 = vpop.f32.mrb[0].mxu1 }
 0x19a   :  { %v1181_v20 = vpop.f32.mrb[3].mxu0  ;;  %v1200_v22 = vpop.f32.mrb[1].mxu1 }
 0x19b   :  { %v598_v21 = vadd.f32 %v1179_v17, %v1083_v15  ;;  %v1201_v23 = vadd.f32 %v1200_v22, %v1199_v19  ;;  %v1202_v24 = vpop.f32.mrb[2].mxu1 }
 0x19c   :  { %v1203_v25 = vpop.f32.mrb[3].mxu1 }
 0x19d   :  { %v638_v26 = vadd.f32 %v1201_v23, %v598_v21 }
 0x1a1   :  { %v717_v27 = vpop.f32.mrb[4].mxu1 }
 0x1a2   :  { %v1260_v28 = vpop.f32.mrb[5].mxu1 }
 0x1a3   :  { %v720_v29 = vpop.f32.mrb[6].mxu1 }
 0x1a4   :  { %v1261_v30 = vpop.f32.mrb[7].mxu1 }
 0x1b7   :  { %v1221_v31 = vpop.f32.mrb[4].mxu0 }
 0x1b8   :  { %v1222_v32 = vpop.f32.mrb[5].mxu0 }
 0x1b9   :  { %v1223_v33 = vadd.f32 %v1222_v32, %v1221_v31  ;;  %v1224_v34 = vpop.f32.mrb[6].mxu0 }
 0x1ba   :  { %v1225_v35 = vpop.f32.mrb[7].mxu0 }
 0x1bb   :  { %v678_v36 = vadd.f32 %v1223_v33, %v638_v26 }
 0x1bd   :  { %v718_v37 = vadd.f32 %v717_v27, %v678_v36 }
 0x1bf   :  { %v723_v38 = vmax.f32 %v718_v37, 0.0 }
 0x1c1   :  { %v724_v39 = vpack.c.bf16 %v723_v38, %v723_v38 }
 0x1c3   :  { %1279 = vmatmul.mubr.bf16.vlgmr.msra.gmra.mrb[8].mxu1 %v724_v39 }
 0x1c4   :  { %1318 = vmatprep.mubr.msk.bf16.mxu1 %vm1653_vm0, %v1652_v44  ;;  %1303 = vmatpush3.bf16.msra.mxu1 %v1401_v42 }
 0x1c5   :  { %1304 = vmatprep.subr.bf16.mxu1 %v1652_v44 }
 0x1c8   :  { %1305 = vmatpush3.bf16.msra.mxu1 %v1402_v43 }
 0x1c9   :  { %1306 = vmatprep.subr.bf16.mxu1 %v1652_v44 }
 0x1cc   :  { %1307 = vmatpush3.bf16.msra.mxu1 %v1403_v45 }
 0x1cd   :  { %1308 = vmatprep.subr.bf16.mxu1 %v1652_v44 }
 0x1d0   :  { %1309 = vmatpush3.bf16.msra.mxu1 %v1404_v46 }
 0x1d1   :  { %1310 = vmatprep.subr.bf16.mxu1 %v1652_v44 }
 0x1d4   :  { %1311 = vmatpush3.bf16.msra.mxu1 %v1405_v47 }
 0x1d5   :  { %1312 = vmatprep.subr.bf16.mxu1 %v1652_v44 }
 0x1d8   :  { %1313 = vmatpush3.bf16.msra.mxu1 %v1406_v48 }
 0x1d9   :  { %1314 = vmatprep.subr.bf16.mxu1 %v1652_v44 }
 0x1dc   :  { %1315 = vmatpush3.bf16.msra.mxu1 %v1407_v57 }
 0x1dd   :  { %1316 = vmatprep.subr.bf16.mxu1 %v1652_v44 }
 0x1e0   :  { %1317 = vmatpush3.bf16.msra.mxu1 %v1408_v58 }
 0x296   :  { %v830_v50 = vpop.f32.mrb[8].mxu1 }
 0x297   :  { %v831_v51 = vadd.f32 %v1134_v49, %v830_v50  ;;  %v1280_v52 = vpop.f32.mrb[9].mxu1 }
 0x298   :  { %v833_v53 = vpop.f32.mrb[10].mxu1 }
 0x299   :  { %v836_v54 = vmax.f32 %v831_v51, 0.0  ;;  %v1281_v55 = vpop.f32.mrb[11].mxu1 }
 0x29b   :  { %v837_v56 = vpack.c.bf16 %v836_v54, %v836_v54 }
 0x29d   :  { %1299 = vmatmul.mubr.bf16.vlgmr.msra.gmra.mrb[8].mxu0 %v837_v56 }
 0x370   :  { %v943_v60 = vpop.f32.mrb[8].mxu0 }
 0x371   :  { %v944_v61 = vadd.f32 %v1143_v59, %v943_v60  ;;  %v1300_v62 = vpop.f32.mrb[9].mxu0 }
 0x372   :  { %v946_v63 = vpop.f32.mrb[10].mxu0 }
 0x373   :  { %v949_v0 = vmax.f32 %v944_v61, 0.0  ;;  %v1301_v1 = vpop.f32.mrb[11].mxu0 }
 0x375   :  { %v950_v2 = vpack.c.bf16 %v949_v0, %v949_v0 }
 0x377   :  { %1319 = vmatmul.mubr.bf16.vlgmr.msra.gmra.mrb[12].mxu1 %v950_v2 }
 0x44a   :  { %v1056_v4 = vpop.f32.mrb[12].mxu1 }
 0x44b   :  { %v1057_v5 = vadd.f32 %v1152_v3, %v1056_v4  ;;  %v1320_v6 = vpop.f32.mrb[13].mxu1 }
 0x44c   :  { %v1059_v7 = vpop.f32.mrb[14].mxu1 }
 0x44d   :  { %v1062_v8 = vpack.c.bf16 %v1057_v5, %v1057_v5  ;;  %v1321_v44 = vpop.f32.mrb[15].mxu1 }
 0x44f   :  { %1063 = vst [vmem:[#allocation17] sm:$0xf] %v1062_v8 }
 0x450   :  { %1618 = shalt.err (!%p1615_p6)
}
 0x451   :  { %s1619_s20 = scalar_lea.hbm %s1879_s9, 64 }
 0x452   :  { %p1620_p7 = scmp.ne.s32.totalorder %s1879_s9, %s1619_s20  ;;  %p1623_p8 = scmp.lt.u32.totalorder %s1619_s20, %s1879_s9 }
 0x454   :  { %p1625_p9 = pnand %p1623_p8, %p1620_p7 }
 0x456   :  { %1628 = shalt.err (!%p1625_p9)
}
 0x457   :  { %1073 = dma.vmem_to_hbm [thread:$0]  %s1071_s24, 64, %s1879_s9, [#allocation4]  }
 0x458   :  { %1639 = dma.done.wait [#allocation4], 64  }
 0x459   :  { %1640 = vsyncadd [#allocation4], 4294967232 }
 0x45a   :  { %1077 = vsyncpa [#allocation3], 1 }
 0x45b   :  { %1078 = vsyncpa [#allocation6], 1 }
 0x45c   :  { %1079 = vsyncpa [#allocation9], 1 }
 0x45d   :  { %1080 = vsyncpa [#allocation12], 1 }
 0x45e   :  { %1081 = vsyncpa [#allocation15], 1 }
 0x45f   :  { %1082 = vsyncpa [#allocation4], 1 }

</bundles_post_ra>
